<compile_context>
chip_gen: v7x
topology: tpu7x:2x2x1
jax: 0.10.0
libtpu: 0.0.40
codegen_flags: <defaults>
</compile_context>

<pallas_src>
import jax
import jax.numpy as jnp
from jax.experimental import pallas as pl
from jax.experimental.pallas import tpu as pltpu


_LANE = 128        # TPU lane width: hidden/output feature axes are padded to this
_NEG_BIG = -1e9    # bias for padded output columns -> ~0 softmax mass, sliced off


# --------------------------------------------------------------------------- #
# Kernels
# --------------------------------------------------------------------------- #
def _sgc_fused_kernel(s2_ref, x_ref, w1_ref, b1_ref, w2_ref, b2_ref, o_ref):
    """Fully fused 2-layer SGC forward; whole (small) graph resident in VMEM.

        H = relu(S2 @ (X @ W1p) + b1p)      (SGConv1 + ReLU, linearity reorder so
                                             every intermediate is 128-lane dense)
        Y = S2 @ (H @ W2p) + b2p            (SGConv2)
        O = log_softmax(Y, axis=1)

    All MXU inputs bf16, accumulation f32; bias / ReLU / log_softmax in f32.
    """
    f32, bf16 = jnp.float32, jnp.bfloat16
    s2 = s2_ref[...]                                                     # [N, N] bf16

    # Layer 1: linear first (output is 128-lane dense), then propagate with S2.
    z1 = jnp.dot(x_ref[...], w1_ref[...], preferred_element_type=f32)   # [N, HIDp]
    h = jnp.dot(s2, z1.astype(bf16), preferred_element_type=f32) + b1_ref[...]
    h = jnp.maximum(h, 0.0)                                              # ReLU
    # Dropout: identity in inference mode.

    # Layer 2: linear first, then propagate with S2.
    z2 = jnp.dot(h.astype(bf16), w2_ref[...], preferred_element_type=f32)  # [N, OUTp]
    y = jnp.dot(s2, z2.astype(bf16), preferred_element_type=f32) + b2_ref[...]

    # log_softmax over classes (padded cols: exactly-zero logits + (-1e9) bias -> 0 mass).
    m = jnp.max(y, axis=1, keepdims=True)
    zs = y - m
    lse = jnp.log(jnp.sum(jnp.exp(zs), axis=1, keepdims=True))
    o_ref[...] = (zs - lse).astype(o_ref.dtype)


def _sgconv1_rowtile_kernel(s2_ref, x_ref, w1_ref, b1_ref, h_ref):
    """One node-row tile of  H = relu(S2 @ X @ W1p + b1p).

    Propagate first (Cin << 128, so S2_tile @ X is the cheap order per tile);
    the linear output / store is 128-lane dense.
    """
    f32, bf16 = jnp.float32, jnp.bfloat16
    p = jnp.dot(s2_ref[...], x_ref[...], preferred_element_type=f32)        # [tm, Cin]
    h = jnp.dot(p.astype(bf16), w1_ref[...], preferred_element_type=f32) + b1_ref[...]
    h_ref[...] = jnp.maximum(h, 0.0).astype(h_ref.dtype)


def _sgconv2_rowtile_kernel(s2_ref, h_ref, w2_ref, b2_ref, o_ref):
    """One node-row tile of  log_softmax(S2 @ H @ W2p + b2p)."""
    f32, bf16 = jnp.float32, jnp.bfloat16
    p = jnp.dot(s2_ref[...], h_ref[...], preferred_element_type=f32)        # [tm, HIDp]
    y = jnp.dot(p.astype(bf16), w2_ref[...], preferred_element_type=f32) + b2_ref[...]
    m = jnp.max(y, axis=1, keepdims=True)
    zs = y - m
    lse = jnp.log(jnp.sum(jnp.exp(zs), axis=1, keepdims=True))
    o_ref[...] = (zs - lse).astype(o_ref.dtype)


# --------------------------------------------------------------------------- #
# One-time prepare step (per graph + params): S2 hoist + weight padding/casts
# --------------------------------------------------------------------------- #
def build_normalized_adjacency(edge_index, num_nodes):
    """Dense S = D^{-1/2} (A + I) D^{-1/2} from a [2, E] edge_index (plain JAX glue).

    Self-loops forced to 1 ("remaining self-loops" semantics); duplicate edges
    collapse to weight 1 (differs from a scatter-add multigraph interpretation).
    """
    src, dst = edge_index[0], edge_index[1]
    a = jnp.zeros((num_nodes, num_nodes), jnp.float32)
    a = a.at[src, dst].set(1.0)
    a = jnp.maximum(a, jnp.eye(num_nodes, dtype=jnp.float32))   # add self-loops
    deg = jnp.sum(a, axis=1)
    dinv = jnp.where(deg > 0, 1.0 / jnp.sqrt(deg), 0.0)
    return dinv[:, None] * a * dinv[None, :]


def prepare_sgc(edge_index, num_nodes, params):
    """Per-graph/per-params prep, run ONCE (not per forward).

    Computes S2 = S @ S in f32 and caches it as bf16, and lane-pads the weights:
      W1p:[Cin,HIDp] zero-padded cols, b1p:[1,HIDp] zero-padded (relu(0)=0),
      W2p:[HIDp,OUTp] zero-padded rows/cols, b2p:[1,OUTp] = -1e9 in padded cols.
    The padded W2 columns are exactly zero (bf16 keeps 0.0 exact), which keeps the
    -1e9 log_softmax masking trick exact.
    """
    in_c, hid_c = params["w1"].shape
    _, out_c = params["w2"].shape
    hid_pad = pl.cdiv(hid_c, _LANE) * _LANE
    out_pad = pl.cdiv(out_c, _LANE) * _LANE

    s = build_normalized_adjacency(edge_index, num_nodes)
    s2 = jnp.dot(s, s)                                   # f32, once per graph

    w1p = jnp.zeros((in_c, hid_pad), jnp.float32).at[:, :hid_c].set(params["w1"])
    b1p = jnp.zeros((1, hid_pad), jnp.float32).at[:, :hid_c].set(params["b1"])
    w2p = jnp.zeros((hid_pad, out_pad), jnp.float32).at[:hid_c, :out_c].set(params["w2"])
    b2p = jnp.full((1, out_pad), _NEG_BIG, jnp.float32).at[:, :out_c].set(params["b2"])

    return {
        "s2": s2.astype(jnp.bfloat16),
        "w1": w1p.astype(jnp.bfloat16),
        "b1": b1p,                      # f32 bias
        "w2": w2p.astype(jnp.bfloat16),
        "b2": b2p,                      # f32 bias (-1e9 in padded cols)
        "n": num_nodes, "in_c": in_c, "out_c": out_c,
        "hid_pad": hid_pad, "out_pad": out_pad,
    }


# --------------------------------------------------------------------------- #
# Forward
# --------------------------------------------------------------------------- #
def _compiler_params(vmem_bytes, dims=None):
    """Explicit VMEM budget (v7x: 64 MiB/TC vs 128 MiB on v5e/v6e)."""
    limit = int(min(max(2 * vmem_bytes + (4 << 20), 16 << 20), 128 << 20))
    if dims is None:
        return pltpu.CompilerParams(vmem_limit_bytes=limit)
    return pltpu.CompilerParams(dimension_semantics=dims, vmem_limit_bytes=limit)


def _sgc_forward_fused(x_bf16, prep):
    """Gridless fully fused path: whole graph resident in VMEM (small/medium N)."""
    n, in_c = x_bf16.shape
    hid_pad, out_pad = prep["hid_pad"], prep["out_pad"]

    flops = (2 * n * n * (hid_pad + out_pad)        # two S2 propagations
             + 2 * n * in_c * hid_pad               # X @ W1
             + 2 * n * hid_pad * out_pad)           # H @ W2
    bytes_acc = (2 * n * n + 2 * n * in_c + 2 * in_c * hid_pad + 2 * hid_pad * out_pad
                 + 4 * (hid_pad + out_pad) + 4 * n * out_pad)
    vmem_bytes = bytes_acc + 4 * n * (2 * hid_pad + 2 * out_pad)   # f32 intermediates

    vmem = pl.BlockSpec(memory_space=pltpu.MemorySpace.VMEM)
    return pl.pallas_call(
        _sgc_fused_kernel,
        out_shape=jax.ShapeDtypeStruct((n, out_pad), jnp.float32),
        in_specs=[vmem] * 6,
        out_specs=vmem,
        compiler_params=_compiler_params(vmem_bytes),
        cost_estimate=pl.CostEstimate(flops=int(flops),
                                      transcendentals=int(n * (out_pad + 1)),
                                      bytes_accessed=int(bytes_acc)),
    )(prep["s2"], x_bf16, prep["w1"], prep["b1"], prep["w2"], prep["b2"])


def _sgc_forward_tiled(x_bf16, prep, tm):
    """Row-tiled path: two pallas_calls (one per SGConv layer), parallel node grid.

    S2 row tiles stream through the pipeline; X / H / weights use constant-index
    BlockSpecs so they stay resident in VMEM. Layer 2 needs all rows of H, which is
    why the two layers are separate calls (H round-trips through HBM as bf16, a
    negligible N*128*2 bytes next to the 2*N^2 bytes of S2 per call).
    """
    n, in_c = x_bf16.shape
    hid_pad, out_pad = prep["hid_pad"], prep["out_pad"]
    grid = (n // tm,)
    dims = ("parallel",)

    # ---- Layer 1: H = relu(S2 @ X @ W1 + b1), one row tile per grid step.
    l1_flops = 2 * n * n * in_c + 2 * n * in_c * hid_pad
    l1_bytes = 2 * n * n + 2 * n * in_c + 2 * in_c * hid_pad + 4 * hid_pad + 2 * n * hid_pad
    l1_vmem = (2 * (2 * tm * n)                 # double-buffered S2 row tiles (bf16)
               + 2 * n * in_c + 2 * in_c * hid_pad + 4 * hid_pad   # resident X / W1 / b1
               + 2 * (2 * tm * hid_pad) + 4 * tm * hid_pad)        # out bufs + f32 temps
    h = pl.pallas_call(
        _sgconv1_rowtile_kernel,
        out_shape=jax.ShapeDtypeStruct((n, hid_pad), jnp.bfloat16),
        grid=grid,
        in_specs=[
            pl.BlockSpec((tm, n), lambda i: (i, 0)),            # S2 row tile (streamed)
            pl.BlockSpec((n, in_c), lambda i: (0, 0)),          # X (resident)
            pl.BlockSpec((in_c, hid_pad), lambda i: (0, 0)),    # W1 (resident)
            pl.BlockSpec((1, hid_pad), lambda i: (0, 0)),       # b1 (resident)
        ],
        out_specs=pl.BlockSpec((tm, hid_pad), lambda i: (i, 0)),
        compiler_params=_compiler_params(l1_vmem, dims),
        cost_estimate=pl.CostEstimate(flops=int(l1_flops), transcendentals=0,
                                      bytes_accessed=int(l1_bytes)),
    )(prep["s2"], x_bf16, prep["w1"], prep["b1"])

    # ---- Layer 2 + log_softmax: Y = S2 @ H @ W2 + b2.
    l2_flops = 2 * n * n * hid_pad + 2 * n * hid_pad * out_pad
    l2_bytes = 2 * n * n + 2 * n * hid_pad + 2 * hid_pad * out_pad + 4 * out_pad + 4 * n * out_pad
    l2_vmem = (2 * (2 * tm * n)
               + 2 * n * hid_pad + 2 * hid_pad * out_pad + 4 * out_pad
               + 2 * (4 * tm * out_pad) + 4 * tm * out_pad)
    out = pl.pallas_call(
        _sgconv2_rowtile_kernel,
        out_shape=jax.ShapeDtypeStruct((n, out_pad), jnp.float32),
        grid=grid,
        in_specs=[
            pl.BlockSpec((tm, n), lambda i: (i, 0)),              # S2 row tile (streamed)
            pl.BlockSpec((n, hid_pad), lambda i: (0, 0)),         # H (resident)
            pl.BlockSpec((hid_pad, out_pad), lambda i: (0, 0)),   # W2 (resident)
            pl.BlockSpec((1, out_pad), lambda i: (0, 0)),         # b2 (resident)
        ],
        out_specs=pl.BlockSpec((tm, out_pad), lambda i: (i, 0)),
        compiler_params=_compiler_params(l2_vmem, dims),
        cost_estimate=pl.CostEstimate(flops=int(l2_flops),
                                      transcendentals=int(n * (out_pad + 1)),
                                      bytes_accessed=int(l2_bytes)),
    )(prep["s2"], h, prep["w2"], prep["b2"])
    return out


def sgc_forward(x, prep, *, row_tile=None):
    """SGC forward: relu(SGConv1(x)) -> dropout(identity) -> SGConv2 -> log_softmax.

    x: [N, Cin] node features; prep: dict from prepare_sgc (cached S2 + padded weights).
    row_tile: node-row tile size for the tiled parallel-grid path (must divide N and
    be a multiple of 8); None / invalid -> fused whole-graph-in-VMEM path.
    """
    n = prep["n"]
    x_bf16 = x.astype(jnp.bfloat16)        # per-call: x is the only per-forward input
    if (row_tile is not None and 0 < row_tile < n
            and n % row_tile == 0 and row_tile % 8 == 0):
        out_pad = _sgc_forward_tiled(x_bf16, prep, row_tile)
    else:
        out_pad = _sgc_forward_fused(x_bf16, prep)
    return out_pad[:, :prep["out_c"]]
    # TODO(synk): many-small-graphs batching (stack S2/X on a leading 'parallel' grid axis).


def init_params(key, input_channels, hidden_channels, output_channels):
    """Deterministic Linear-style init: U(-1/sqrt(fan_in), 1/sqrt(fan_in))."""
    k1, k2, k3, k4 = jax.random.split(key, 4)

    def lin(kw, kb, fan_in, fan_out):
        bound = 1.0 / jnp.sqrt(jnp.float32(fan_in))
        w = jax.random.uniform(kw, (fan_in, fan_out), jnp.float32, -bound, bound)
        b = jax.random.uniform(kb, (1, fan_out), jnp.float32, -bound, bound)
        return w, b

    w1, b1 = lin(k1, k2, input_channels, hidden_channels)
    w2, b2 = lin(k3, k4, hidden_channels, output_channels)
    return {"w1": w1, "b1": b1, "w2": w2, "b2": b2}


# --------------------------------------------------------------------------- #
# Demo / self-check
# --------------------------------------------------------------------------- #
if __name__ == "__main__":
    IN_C, HID_C, OUT_C = 16, 32, 8
    key = jax.random.PRNGKey(0)

    def make_graph(n):
        # Deterministic undirected graph: ring + chords (both directions).
        src, dst = [], []
        for i in range(n):
            j = (i + 1) % n
            src += [i, j]; dst += [j, i]
            c = (i + 5) % n
            src += [i, c]; dst += [c, i]
        return jnp.array([src, dst], dtype=jnp.int32)

    def reference_forward(x, s, params):
        # Pure f32 JAX reference of the PyTorch module (inference, dropout=identity).
        s2 = s @ s
        h = jnp.maximum(s2 @ x @ params["w1"] + params["b1"], 0.0)
        y = s2 @ h @ params["w2"] + params["b2"]
        return jax.nn.log_softmax(y, axis=1)

    # ---- Small graph: fused whole-graph-in-VMEM path.
    N1 = 32
    k1, k2, key = jax.random.split(key, 3)
    x1 = jax.random.normal(k1, (N1, IN_C), jnp.float32)
    params1 = init_params(k2, IN_C, HID_C, OUT_C)
    ei1 = make_graph(N1)
    prep1 = prepare_sgc(ei1, N1, params1)                 # one-time prep (S2 hoisted)
    out1 = jax.block_until_ready(sgc_forward(x1, prep1))
    ref1 = reference_forward(x1, build_normalized_adjacency(ei1, N1), params1)
    assert out1.shape == (N1, OUT_C)
    assert bool(jnp.all(jnp.isfinite(out1)))
    assert bool(jnp.all(jnp.abs(jnp.sum(jnp.exp(out1), axis=1) - 1.0) < 1e-3))
    assert bool(jnp.max(jnp.abs(out1 - ref1)) < 0.25)     # bf16 MXU / f32 ref tolerance

    # ---- Medium graph: row-tiled parallel-grid path, cross-checked vs fused path.
    N2 = 256
    k3, k4, key = jax.random.split(key, 3)
    x2 = jax.random.normal(k3, (N2, IN_C), jnp.float32)
    params2 = init_params(k4, IN_C, HID_C, OUT_C)
    ei2 = make_graph(N2)
    prep2 = prepare_sgc(ei2, N2, params2)
    out2_tiled = jax.block_until_ready(sgc_forward(x2, prep2, row_tile=64))
    out2_fused = jax.block_until_ready(sgc_forward(x2, prep2))
    ref2 = reference_forward(x2, build_normalized_adjacency(ei2, N2), params2)
    assert out2_tiled.shape == (N2, OUT_C) and out2_fused.shape == (N2, OUT_C)
    assert bool(jnp.all(jnp.isfinite(out2_tiled)))
    assert bool(jnp.all(jnp.abs(jnp.sum(jnp.exp(out2_tiled), axis=1) - 1.0) < 1e-3))
    assert bool(jnp.max(jnp.abs(out2_tiled - out2_fused)) < 0.25)
    assert bool(jnp.max(jnp.abs(out2_tiled - ref2)) < 0.25)

    print("KERNEL_OK")
</pallas_src>

<mosaic_0001>
module attributes {stable_mosaic.version = 11 : i64} {
  func.func @_sgc_fused_kernel(%arg0: memref<32x32xbf16, #tpu.memory_space<vmem>>, %arg1: memref<32x16xbf16, #tpu.memory_space<vmem>>, %arg2: memref<16x128xbf16, #tpu.memory_space<vmem>>, %arg3: memref<1x128xf32, #tpu.memory_space<vmem>>, %arg4: memref<128x128xbf16, #tpu.memory_space<vmem>>, %arg5: memref<1x128xf32, #tpu.memory_space<vmem>>, %arg6: memref<32x128xf32, #tpu.memory_space<vmem>>) attributes {dimension_semantics = [], scalar_prefetch = 0 : i64, scratch_operands = 0 : i64, tpu.core_type = #tpu.core_type<tc>} {
    %c0 = arith.constant 0 : index
    %c0_0 = arith.constant 0 : index
    %0 = vector.load %arg0[%c0, %c0_0] : memref<32x32xbf16, #tpu.memory_space<vmem>>, vector<32x32xbf16>
    %c0_1 = arith.constant 0 : index
    %c0_2 = arith.constant 0 : index
    %1 = vector.load %arg1[%c0_1, %c0_2] : memref<32x16xbf16, #tpu.memory_space<vmem>>, vector<32x16xbf16>
    %c0_3 = arith.constant 0 : index
    %c0_4 = arith.constant 0 : index
    %2 = vector.load %arg2[%c0_3, %c0_4] : memref<16x128xbf16, #tpu.memory_space<vmem>>, vector<16x128xbf16>
    %cst = arith.constant dense<0.000000e+00> : vector<32x128xf32>
    %3 = tpu.matmul %1, %2, %cst {dimension_numbers = #tpu.dot_dimension_numbers<[1], [0], [0], [1], [0, 0, 1, 1], [], []>} : vector<32x16xbf16>, vector<16x128xbf16>, vector<32x128xf32> -> vector<32x128xf32>
    %4 = arith.truncf %3 : vector<32x128xf32> to vector<32x128xbf16>
    %cst_5 = arith.constant dense<0.000000e+00> : vector<32x128xf32>
    %5 = tpu.matmul %0, %4, %cst_5 {dimension_numbers = #tpu.dot_dimension_numbers<[1], [0], [0], [1], [0, 0, 1, 1], [], []>} : vector<32x32xbf16>, vector<32x128xbf16>, vector<32x128xf32> -> vector<32x128xf32>
    %c0_6 = arith.constant 0 : index
    %c0_7 = arith.constant 0 : index
    %6 = vector.load %arg3[%c0_6, %c0_7] : memref<1x128xf32, #tpu.memory_space<vmem>>, vector<1x128xf32>
    %7 = vector.broadcast %6 : vector<1x128xf32> to vector<32x128xf32>
    %8 = arith.addf %5, %7 : vector<32x128xf32>
    %cst_8 = arith.constant 0.000000e+00 : f32
    %9 = vector.broadcast %cst_8 : f32 to vector<32x128xf32>
    %10 = arith.maximumf %8, %9 : vector<32x128xf32>
    %11 = arith.truncf %10 : vector<32x128xf32> to vector<32x128xbf16>
    %c0_9 = arith.constant 0 : index
    %c0_10 = arith.constant 0 : index
    %12 = vector.load %arg4[%c0_9, %c0_10] : memref<128x128xbf16, #tpu.memory_space<vmem>>, vector<128x128xbf16>
    %cst_11 = arith.constant dense<0.000000e+00> : vector<32x128xf32>
    %13 = tpu.matmul %11, %12, %cst_11 {dimension_numbers = #tpu.dot_dimension_numbers<[1], [0], [0], [1], [0, 0, 1, 1], [], []>} : vector<32x128xbf16>, vector<128x128xbf16>, vector<32x128xf32> -> vector<32x128xf32>
    %14 = arith.truncf %13 : vector<32x128xf32> to vector<32x128xbf16>
    %cst_12 = arith.constant dense<0.000000e+00> : vector<32x128xf32>
    %15 = tpu.matmul %0, %14, %cst_12 {dimension_numbers = #tpu.dot_dimension_numbers<[1], [0], [0], [1], [0, 0, 1, 1], [], []>} : vector<32x32xbf16>, vector<32x128xbf16>, vector<32x128xf32> -> vector<32x128xf32>
    %c0_13 = arith.constant 0 : index
    %c0_14 = arith.constant 0 : index
    %16 = vector.load %arg5[%c0_13, %c0_14] : memref<1x128xf32, #tpu.memory_space<vmem>>, vector<1x128xf32>
    %17 = vector.broadcast %16 : vector<1x128xf32> to vector<32x128xf32>
    %18 = arith.addf %15, %17 : vector<32x128xf32>
    %cst_15 = arith.constant dense<0xFF800000> : vector<32xf32>
    %19 = vector.multi_reduction <maximumf>, %18, %cst_15 [1] : vector<32x128xf32> to vector<32xf32>
    %20 = vector.shape_cast %19 : vector<32xf32> to vector<32x1xf32>
    %21 = vector.broadcast %20 : vector<32x1xf32> to vector<32x128xf32>
    %22 = arith.subf %18, %21 : vector<32x128xf32>
    %23 = math.exp %22 : vector<32x128xf32>
    %cst_16 = arith.constant dense<0.000000e+00> : vector<32xf32>
    %24 = vector.multi_reduction <add>, %23, %cst_16 [1] : vector<32x128xf32> to vector<32xf32>
    %25 = vector.shape_cast %24 : vector<32xf32> to vector<32x1xf32>
    %26 = math.log %25 : vector<32x1xf32>
    %27 = vector.broadcast %26 : vector<32x1xf32> to vector<32x128xf32>
    %28 = arith.subf %22, %27 : vector<32x128xf32>
    %c0_17 = arith.constant 0 : index
    %c0_18 = arith.constant 0 : index
    %29 = vector.load %arg6[%c0_17, %c0_18] : memref<32x128xf32, #tpu.memory_space<vmem>>, vector<32x128xf32>
    tpu.vector_store %arg6[%c0_17, %c0_18], %28 {strides = array<i32>} : memref<32x128xf32, #tpu.memory_space<vmem>>, vector<32x128xf32>,
    return
  }
}

</mosaic_0001>

<bundles_post_ra>
// kernel: tpu_custom_call.1
= control target key start
LH: loop header
LB: loop body
LE: loop exit
PB: predicated region body
PF: predicated region fallthrough
CT: control target
= control target key end

     0   :  { %11 = vsyncpa [#allocation3], 0  ;;  %s691_s0 = inlined_call_operand.vmem [shape: bf16[32,32], index: 0, kind: input, shape index: {}]   ;;  %s692_s1 = inlined_call_operand.vmem [shape: bf16[32,16], index: 1, kind: input, shape index: {}]   ;;  %s693_s2 = inlined_call_operand.vmem [shape: bf16[16,128], index: 2, kind: input, shape index: {}]   ;;  %s694_s3 = inlined_call_operand.vmem [shape: f32[1,128], index: 3, kind: input, shape index: {}]   ;;  %s695_s4 = inlined_call_operand.hbm [shape: bf16[128,128], index: 4, kind: input, shape index: {}]   ;;  %s696_s5 = inlined_call_operand.vmem [shape: f32[1,128], index: 5, kind: input, shape index: {}]   ;;  %s697_s6 = inlined_call_operand.hbm [shape: f32[32,128], index: 6, kind: output, shape index: {}]  }
   0x1   :  { %12 = vsyncpa [#allocation4], 0  ;;  %s601_s21 = smov [#allocation2]   ;;  %s553_s25 = scalar_lea.hbm %s695_s4, 1024 }
   0x2   :  { %s26_s22 = sshll.u32 %s601_s21, 4  ;;  %p554_p0 = scmp.ne.s32.totalorder %s695_s4, %s553_s25  ;;  %s27_s22 = int_to_ptr.vmem [resolvable:$true] %s26_s22 }
   0x3   :  { %p557_p1 = scmp.lt.u32.totalorder %s553_s25, %s695_s4 }
   0x5   :  { %p559_p2 = pnand %p557_p1, %p554_p0 }
   0x7   :  { %562 = shalt.err (!%p559_p2)
}
   0x8   :  { %s563_s30 = scalar_lea.vmem %s27_s22, 1024  ;;  %p568_p4 = scmp.lt.s32.totalorder %s27_s22, %s27_s22 }
   0x9   :  { %p564_p3 = scmp.ne.s32.totalorder %s27_s22, %s563_s30  ;;  %p569_p5 = scmp.lt.s32.totalorder %s563_s30, %s563_s30 }
   0xb   :  { %p570_p6 = por %p569_p5, %p568_p4 }
   0xd   :  { %p571_p7 = pnand %p570_p6, %p564_p3 }
   0xf   :  { %574 = shalt.err (!%p571_p7)
}
  0x10   :  { %s602_s7 = smov 64   ;;  %s603_s8 = smov 4  }
  0x11   :  { %32 = dma.hbm_to_vmem [thread:$0]  %s695_s4, 1024, %s27_s22, [#allocation3], %s602_s7, %s602_s7, %s603_s8  }
  0x12   :  { %597 = dma.done.wait [#allocation3], 1024  }
  0x13   :  { %598 = vsyncadd [#allocation3], 4294966272  ;;  %v524_v0 = vld [vmem:[%s693_s2] sm:$0xff]   ;;  %vm65_vm0 = vcmask 130048   ;;  %v526_v2 = vld [vmem:[%s692_s1 + $0x8] sm:$0xff]   ;;  %vm140_vm1 = vcmask 261120  }
  0x14   :  { %v525_v1 = vld [vmem:[%s692_s1] sm:$0xff]   ;;  %476 = vmatprep.subr.bf16.mxu1 %v524_v0  ;;  %v530_v5 = vld [vmem:[#allocation2 + $0x8] sm:$0xff]   ;;  %v531_v6 = vld [vmem:[#allocation2 + $0x10] sm:$0xff]  }
  0x15   :  { %477 = vmatpush3.bf16.msra.mxu1 %v524_v0  ;;  %478 = vmatprep.mubr.msk.bf16.mxu1 %vm65_vm0, %v525_v1  ;;  %v527_v3 = vld [vmem:[%s691_s0] sm:$0xff]   ;;  %v532_v7 = vld [vmem:[#allocation2 + $0x18] sm:$0xff]   ;;  %v534_v9 = vld [vmem:[#allocation2 + $0x28] sm:$0xff]  }
  0x16   :  { %v529_v4 = vld [vmem:[#allocation2] sm:$0xff]   ;;  %v528_v16 = vld [vmem:[%s691_s0 + $0x8] sm:$0xff]   ;;  %v535_v17 = vld [vmem:[#allocation2 + $0x30] sm:$0xff]  }
  0x17   :  { %490 = vmatprep.subr.bf16.mxu0 %v529_v4  ;;  %v533_v8 = vld [vmem:[#allocation2 + $0x20] sm:$0xff]   ;;  %v536_v18 = vld [vmem:[#allocation2 + $0x38] sm:$0xff]  }
  0x18   :  { %479 = vmatmul.mubr.msk.bf16.vlgmr.msra.gmra.mrb[0].mxu1 %vm65_vm0, %v526_v2  ;;  %491 = vmatpush3.bf16.msra.mxu0 %v529_v4  ;;  %v439_v19 = vld [vmem:[%s694_s3] ss:$0 sm:$0xff] }
  0x19   :  { %486 = vmatprep.mubr.msk.bf16.mxu1 %vm140_vm1, %v527_v3  ;;  %492 = vmatprep.subr.bf16.mxu0 %v530_v5  ;;  %v452_v40 = vld [vmem:[%s696_s5] ss:$0 sm:$0xff]  ;;  %s604_s5 = smov [#allocation5]  }
  0x1a   :  { %s422_s20 = sshll.u32 %s604_s5, 4  ;;  %s423_s20 = int_to_ptr.vmem [resolvable:$true] %s422_s20 }
  0x1b   :  { %s575_s21 = scalar_lea.vmem %s423_s20, 512  ;;  %p580_p9 = scmp.lt.s32.totalorder %s423_s20, %s423_s20 }
  0x1c   :  { %493 = vmatpush3.bf16.msra.mxu0 %v530_v5  ;;  %p576_p8 = scmp.ne.s32.totalorder %s423_s20, %s575_s21  ;;  %p581_p10 = scmp.lt.s32.totalorder %s575_s21, %s575_s21 }
  0x1d   :  { %494 = vmatprep.subr.bf16.mxu0 %v531_v6 }
  0x1e   :  { %p582_p11 = por %p581_p10, %p580_p9 }
  0x20   :  { %495 = vmatpush3.bf16.msra.mxu0 %v531_v6  ;;  %p583_p12 = pnand %p582_p11, %p576_p8 }
  0x21   :  { %496 = vmatprep.subr.bf16.mxu0 %v532_v7 }
  0x24   :  { %497 = vmatpush3.bf16.msra.mxu0 %v532_v7 }
  0x25   :  { %498 = vmatprep.subr.bf16.mxu0 %v533_v8 }
  0x28   :  { %499 = vmatpush3.bf16.msra.mxu0 %v533_v8 }
  0x29   :  { %500 = vmatprep.subr.bf16.mxu0 %v534_v9 }
  0x2c   :  { %501 = vmatpush3.bf16.msra.mxu0 %v534_v9 }
  0x2d   :  { %502 = vmatprep.subr.bf16.mxu0 %v535_v17 }
  0x30   :  { %503 = vmatpush3.bf16.msra.mxu0 %v535_v17 }
  0x31   :  { %504 = vmatprep.subr.bf16.mxu0 %v536_v18 }
  0x34   :  { %505 = vmatpush3.bf16.msra.mxu0 %v536_v18 }
  0xeb   :  { %v480_v10 = vpop.f32.mrb[0].mxu1 }
  0xec   :  { %v106_v11 = vpop.f32.mrb[1].mxu1 }
  0xed   :  { %v481_v12 = vpop.f32.mrb[2].mxu1 }
  0xee   :  { %v122_v13 = vpack.c.bf16 %v481_v12, %v480_v10  ;;  %v109_v14 = vpop.f32.mrb[3].mxu1 }
  0xef   :  { %v121_v15 = vpack.c.bf16 %v109_v14, %v106_v11 }
  0xf1   :  { %482 = vmatprep.subr.bf16.mxu1 %v121_v15 }
  0xf2   :  { %483 = vmatpush3.bf16.msra.mxu1 %v121_v15 }
  0xf3   :  { %484 = vmatprep.subr.bf16.mxu1 %v122_v13 }
  0xf6   :  { %485 = vmatpush3.bf16.msra.mxu1 %v122_v13 }
  0xf9   :  { %487 = vmatmul.mubr.msk.bf16.vlgmr.msra.gmra.mrb[4].mxu1 %vm140_vm1, %v528_v16 }
  0xfa   :  { %514 = vmatprep.mubr.msk.bf16.mxu1 %vm140_vm1, %v527_v3 }
 0x1cc   :  { %v488_v20 = vpop.f32.mrb[4].mxu1 }
 0x1cd   :  { %v190_v21 = vadd.f32 %v488_v20, %v439_v19  ;;  %v181_v22 = vpop.f32.mrb[5].mxu1 }
 0x1ce   :  { %v182_v23 = vadd.f32 %v439_v19, %v181_v22  ;;  %v489_v24 = vpop.f32.mrb[6].mxu1 }
 0x1cf   :  { %v193_v25 = vadd.f32 %v489_v24, %v439_v19  ;;  %v184_v26 = vpop.f32.mrb[7].mxu1  ;;  %v198_v28 = vmax.f32 %v190_v21, 0.0 }
 0x1d0   :  { %v185_v27 = vadd.f32 %v439_v19, %v184_v26  ;;  %v196_v30 = vmax.f32 %v182_v23, 0.0 }
 0x1d1   :  { %v199_v29 = vmax.f32 %v193_v25, 0.0 }
 0x1d2   :  { %v197_v31 = vmax.f32 %v185_v27, 0.0 }
 0x1d3   :  { %v201_v32 = vpack.c.bf16 %v199_v29, %v198_v28 }
 0x1d4   :  { %v200_v33 = vpack.c.bf16 %v197_v31, %v196_v30 }
 0x1d6   :  { %506 = vmatprep.mubr.bf16.mxu0 %v200_v33 }
 0x1d7   :  { %507 = vmatmul.mubr.bf16.vlgmr.msra.gmra.mrb[0].mxu0 %v201_v32 }
 0x2aa   :  { %v508_v34 = vpop.f32.mrb[0].mxu0 }
 0x2ab   :  { %v300_v35 = vpop.f32.mrb[1].mxu0 }
 0x2ac   :  { %v509_v36 = vpop.f32.mrb[2].mxu0 }
 0x2ad   :  { %v316_v37 = vpack.c.bf16 %v509_v36, %v508_v34  ;;  %v303_v38 = vpop.f32.mrb[3].mxu0 }
 0x2ae   :  { %v315_v39 = vpack.c.bf16 %v303_v38, %v300_v35 }
 0x2b0   :  { %510 = vmatprep.subr.bf16.mxu1 %v315_v39 }
 0x2b1   :  { %511 = vmatpush3.bf16.msra.mxu1 %v315_v39 }
 0x2b2   :  { %512 = vmatprep.subr.bf16.mxu1 %v316_v37 }
 0x2b5   :  { %513 = vmatpush3.bf16.msra.mxu1 %v316_v37 }
 0x2b8   :  { %515 = vmatmul.mubr.msk.bf16.vlgmr.msra.gmra.mrb[8].mxu1 %vm140_vm1, %v528_v16 }
 0x38b   :  { %v516_v41 = vpop.f32.mrb[8].mxu1 }
 0x38c   :  { %v367_v42 = vadd.f32 %v516_v41, %v452_v40  ;;  %v358_v43 = vpop.f32.mrb[9].mxu1 }
 0x38d   :  { %v359_v44 = vadd.f32 %v452_v40, %v358_v43  ;;  %v517_v45 = vpop.f32.mrb[10].mxu1 }
 0x38e   :  { %377 = vmax.xlane.f32.xlu1 %v367_v42  ;;  %v361_v46 = vpop.f32.mrb[11].mxu1  ;;  %v370_v47 = vadd.f32 %v517_v45, %v452_v40 }
 0x38f   :  { %373 = vmax.xlane.f32.xlu0 %v359_v44  ;;  %v362_v48 = vadd.f32 %v452_v40, %v361_v46 }
 0x392   :  { %379 = vmax.xlane.f32.xlu1 %v370_v47 }
 0x393   :  { %375 = vmax.xlane.f32.xlu0 %v362_v48 }
 0x41b   :  { %v378_v49 = vpop.xlane.xlu1 %377 }
 0x41c   :  { %v383_v50 = vsub.f32 %v367_v42, %v378_v49  ;;  %v374_v51 = vpop.xlane.xlu0 %373 }
 0x41d   :  { %v381_v52 = vsub.f32 %v359_v44, %v374_v51 }
 0x41e   :  { %v389_v55 = vmul.f32 1.442695, %v383_v50 }
 0x41f   :  { %v385_v53 = vmul.f32 1.442695, %v381_v52  ;;  %v380_v54 = vpop.xlane.xlu1 %379 }
 0x420   :  { %v376_v56 = vpop.xlane.xlu0 %375  ;;  %v384_v57 = vsub.f32 %v370_v47, %v380_v54 }
 0x421   :  { %537 = vpow2.f32 %v385_v53  ;;  %v382_v58 = vsub.f32 %v362_v48, %v376_v56 }
 0x422   :  { %539 = vpow2.f32 %v389_v55  ;;  %v391_v60 = vmul.f32 1.442695, %v384_v57 }
 0x423   :  { %v387_v59 = vmul.f32 1.442695, %v382_v58 }
 0x425   :  { %541 = vpow2.f32 %v387_v59 }
 0x426   :  { %543 = vpow2.f32 %v391_v60 }
 0x42b   :  { %v538_v61 = vpop.eup %537 }
 0x42c   :  { %393 = vadd.xlane.f32.xlu0 %v538_v61  ;;  %v540_v62 = vpop.eup %539 }
 0x42f   :  { %v542_v63 = vpop.eup %541 }
 0x430   :  { %397 = vadd.xlane.f32.xlu0 %v540_v62  ;;  %395 = vadd.xlane.f32.xlu1 %v542_v63  ;;  %v544_v0 = vpop.eup %543 }
 0x434   :  { %399 = vadd.xlane.f32.xlu1 %v544_v0 }
 0x4b9   :  { %v394_v1 = vpop.xlane.xlu0 %393 }
 0x4ba   :  { %545 = vlog2.f32 %v394_v1 }
 0x4bd   :  { %v396_v2 = vpop.xlane.xlu1 %395  ;;  %v398_v3 = vpop.xlane.xlu0 %397 }
 0x4be   :  { %547 = vlog2.f32 %v396_v2 }
 0x4bf   :  { %549 = vlog2.f32 %v398_v3 }
 0x4c1   :  { %v400_v4 = vpop.xlane.xlu1 %399 }
 0x4c2   :  { %551 = vlog2.f32 %v400_v4 }
 0x4c4   :  { %v546_v5 = vpop.eup %545 }
 0x4c5   :  { %v402_v6 = vmul.f32 0.6931472, %v546_v5 }
 0x4c7   :  { %v409_v7 = vsub.f32 %v381_v52, %v402_v6 }
 0x4c8   :  { %v548_v8 = vpop.eup %547 }
 0x4c9   :  { %v550_v9 = vpop.eup %549  ;;  %413 = vst [vmem:[#allocation5] sm:$0xff] %v409_v7  ;;  %v404_v10 = vmul.f32 0.6931472, %v548_v8 }
 0x4ca   :  { %v406_v11 = vmul.f32 0.6931472, %v550_v9 }
 0x4cb   :  { %v410_v12 = vsub.f32 %v382_v58, %v404_v10 }
 0x4cc   :  { %v552_v13 = vpop.eup %551  ;;  %v411_v14 = vsub.f32 %v383_v50, %v406_v11 }
 0x4cd   :  { %414 = vst [vmem:[#allocation5 + $0x8] sm:$0xff] %v410_v12  ;;  %v408_v15 = vmul.f32 0.6931472, %v552_v13 }
 0x4ce   :  { %415 = vst [vmem:[#allocation5 + $0x10] sm:$0xff] %v411_v14 }
 0x4cf   :  { %v412_v16 = vsub.f32 %v384_v57, %v408_v15 }
 0x4d1   :  { %416 = vst [vmem:[#allocation5 + $0x18] sm:$0xff] %v412_v16 }
 0x4d2   :  { %586 = shalt.err (!%p583_p12)
}
 0x4d3   :  { %s587_s24 = scalar_lea.hbm %s697_s6, 512 }
 0x4d4   :  { %p588_p13 = scmp.ne.s32.totalorder %s697_s6, %s587_s24  ;;  %p591_p0 = scmp.lt.u32.totalorder %s587_s24, %s697_s6 }
 0x4d6   :  { %p593_p1 = pnand %p591_p0, %p588_p13 }
 0x4d8   :  { %596 = shalt.err (!%p593_p1)
}
 0x4d9   :  { %s605_s29 = smov 128   ;;  %s606_s30 = smov 8  }
 0x4da   :  { %428 = dma.vmem_to_hbm [thread:$0]  %s423_s20, 512, %s697_s6, [#allocation4], %s605_s29, %s605_s29, %s606_s30  }
 0x4db   :  { %599 = dma.done.wait [#allocation4], 512  }
 0x4dc   :  { %600 = vsyncadd [#allocation4], 4294966784 }
 0x4dd   :  { %432 = vsyncpa [#allocation3], 1 }
 0x4de   :  { %433 = vsyncpa [#allocation4], 1 }

</bundles_post_ra>
